<compile_context>
chip_gen: v7x
topology: tpu7x:2x2x1
jax: 0.10.0
libtpu: 0.0.40
codegen_flags: <defaults>
</compile_context>

<pallas_src>
import functools
import math

import jax
import jax.numpy as jnp
from jax.experimental import pallas as pl
from jax.experimental.pallas import tpu as pltpu


# --------------------------------------------------------------------------- helpers

def _round_up(x, m):
    return ((x + m - 1) // m) * m


def _dsize(dt):
    return jnp.dtype(dt).itemsize


def _vmem_budget_bytes():
    """Per-core VMEM budget: ~75% of physical capacity (leaves headroom for
    compiler-internal scratch).  Falls back to the v7x per-TC size (64 MiB,
    the smallest across generations) if the query is unavailable."""
    cap = 64 * 1024 * 1024
    try:
        cap = int(getattr(pltpu.get_tpu_info(), "vmem_capacity_bytes", cap))
    except Exception:
        pass
    return (3 * cap) // 4


def _vmem_limit(ws_bytes, budget):
    limit = int(ws_bytes * 1.25) + (2 << 20)
    limit = max(limit, 32 << 20)       # never below the common scoped default
    return min(limit, budget)


def _pick_tm(M, tm_target, sub):
    """Row-tile size: a multiple of `sub` (sublane packing of the compute
    dtype), never larger than M (the partial last tile is masked by Pallas),
    and split into >=2 tiles for small M so the v7x megacore can shard the
    "parallel" row axis across both TensorCores."""
    tm_target = max(sub, (tm_target // sub) * sub)
    if M <= sub:
        return M                         # single full-extent block
    if M <= tm_target:
        half = _round_up((M + 1) // 2, sub)
        return half if half < M else M
    return tm_target


def _pick_tn(h4, target):
    """Largest multiple of 128 that divides h4 and is <= target, else full h4."""
    if h4 <= target:
        return h4
    tn = (target // 128) * 128
    while tn >= 128:
        if h4 % tn == 0:
            return tn
        tn -= 128
    return h4


def _resident_ws_bytes(tm, H, H4, cdt, odt):
    c, o = _dsize(cdt), _dsize(odt)
    weights = 2 * (H * H4 + H4 * H) * c       # W1 + W2 (assume double-buffered)
    acts = 2 * tm * H * (c + o)               # x tile in + out tile, double-buffered
    inter = tm * H4 * 4                       # f32 (tm, 4H) intermediate
    biases = 2 * (H4 + H) * 4
    return weights + acts + inter + biases


def _chunked_ws_bytes(tm, tn, H, cdt, odt):
    c, o = _dsize(cdt), _dsize(odt)
    weights = 2 * (H * tn + tn * H) * c       # W1/W2 chunks, double-buffered
    acts = 2 * tm * H * (c + o)
    acc = tm * H * 4
    inter = tm * tn * 4
    biases = 2 * (tn + H) * 4
    return weights + acts + acc + inter + biases


# --------------------------------------------------------------------------- kernels

def _gelu_exact(h):
    # Exact erf GELU (torch.nn.GELU() default).  erf is a VALU polynomial;
    # only swap for the tanh approximation if a bundle profile shows VALU as
    # the binding slot (the MXU hides it on all current chips).
    return 0.5 * h * (1.0 + jax.lax.erf(h * jnp.float32(1.0 / math.sqrt(2.0))))


def _mlp_resident_kernel(x_ref, w1_ref, b1_ref, w2_ref, b2_ref, o_ref):
    """Whole MLP for one row tile; W1/W2 fully VMEM-resident (constant blocks).

    x_ref : (tm, H)   activations
    w1_ref: (H, H4)   full c_fc weight
    b1_ref: (1, H4)   c_fc bias (f32)
    w2_ref: (H4, H)   full c_proj weight
    b2_ref: (1, H)    c_proj bias (f32)
    o_ref : (tm, H)   output tile
    """
    h = jnp.dot(x_ref[...], w1_ref[...], preferred_element_type=jnp.float32)
    h = _gelu_exact(h + b1_ref[...])
    o = jnp.dot(h.astype(w2_ref.dtype), w2_ref[...],
                preferred_element_type=jnp.float32)
    o_ref[...] = (o + b2_ref[...]).astype(o_ref.dtype)


def _mlp_chunked_kernel(x_ref, w1_ref, b1_ref, w2_ref, b2_ref, o_ref, acc_ref):
    """One (row-tile, 4H-chunk) step of the weight-streaming MLP.

    Grid = (M/tm, H4/tn); the last (k, "arbitrary") axis chunks the 4H
    intermediate width so only (H, tn) / (tn, H) weight slices are resident.
    """
    k = pl.program_id(1)

    @pl.when(k == 0)
    def _():
        # Fold c_proj's bias into the accumulator init (saves a (tm, H) add
        # and a zero-fill on the finalize pass).
        acc_ref[...] = jnp.broadcast_to(b2_ref[...], acc_ref.shape)

    h = jnp.dot(x_ref[...], w1_ref[...], preferred_element_type=jnp.float32)
    h = _gelu_exact(h + b1_ref[...])
    acc_ref[...] += jnp.dot(h.astype(w2_ref.dtype), w2_ref[...],
                            preferred_element_type=jnp.float32)

    @pl.when(k == pl.num_programs(1) - 1)
    def _():
        o_ref[...] = acc_ref[...].astype(o_ref.dtype)


# --------------------------------------------------------------------------- pallas_call wrappers

@functools.partial(jax.jit, static_argnames=("tm", "out_dtype", "vmem_limit"))
def _mlp_resident(x2, w1, b1_2d, w2, b2_2d, *, tm, out_dtype, vmem_limit):
    M, H = x2.shape
    H4 = w1.shape[1]
    return pl.pallas_call(
        _mlp_resident_kernel,
        out_shape=jax.ShapeDtypeStruct((M, H), out_dtype),
        grid_spec=pltpu.PrefetchScalarGridSpec(
            num_scalar_prefetch=0,
            grid=(pl.cdiv(M, tm),),
            in_specs=[
                pl.BlockSpec((tm, H), lambda i: (i, 0)),    # activations
                pl.BlockSpec((H, H4), lambda i: (0, 0)),    # W1 (resident)
                pl.BlockSpec((1, H4), lambda i: (0, 0)),    # b1
                pl.BlockSpec((H4, H), lambda i: (0, 0)),    # W2 (resident)
                pl.BlockSpec((1, H), lambda i: (0, 0)),     # b2
            ],
            out_specs=pl.BlockSpec((tm, H), lambda i: (i, 0)),
        ),
        compiler_params=pltpu.CompilerParams(
            dimension_semantics=("parallel",),
            vmem_limit_bytes=vmem_limit,
        ),
    )(x2, w1, b1_2d, w2, b2_2d)


@functools.partial(jax.jit, static_argnames=("tm", "tn", "out_dtype", "vmem_limit"))
def _mlp_chunked(x2, w1, b1_2d, w2, b2_2d, *, tm, tn, out_dtype, vmem_limit):
    M, H = x2.shape
    H4 = w1.shape[1]
    grid = (pl.cdiv(M, tm), H4 // tn)
    return pl.pallas_call(
        _mlp_chunked_kernel,
        out_shape=jax.ShapeDtypeStruct((M, H), out_dtype),
        grid_spec=pltpu.PrefetchScalarGridSpec(
            num_scalar_prefetch=0,
            grid=grid,
            in_specs=[
                pl.BlockSpec((tm, H), lambda i, k: (i, 0)),   # activations (resident over k)
                pl.BlockSpec((H, tn), lambda i, k: (0, k)),   # W1 chunk
                pl.BlockSpec((1, tn), lambda i, k: (0, k)),   # b1 chunk
                pl.BlockSpec((tn, H), lambda i, k: (k, 0)),   # W2 chunk
                pl.BlockSpec((1, H), lambda i, k: (0, 0)),    # b2 (full)
            ],
            out_specs=pl.BlockSpec((tm, H), lambda i, k: (i, 0)),
            scratch_shapes=[pltpu.VMEM((tm, H), jnp.float32)],
        ),
        compiler_params=pltpu.CompilerParams(
            dimension_semantics=("parallel", "arbitrary"),
            vmem_limit_bytes=vmem_limit,
        ),
    )(x2, w1, b1_2d, w2, b2_2d)


# --------------------------------------------------------------------------- public entry point

def reference_encoder_mlp(image_embeds, w1, b1, w2, b2, *, tm=512, tn=1024,
                          compute_dtype=jnp.bfloat16, force_chunked=False):
    """MLP branch of ReferenceEncoder.forward on precomputed image_embeds.

    image_embeds: (B, S, H)   (CLIP hidden_states[-2])
    w1: (H, 4H), b1: (4H,), w2: (4H, H), b2: (H,)
    returns: (B, S, H) in image_embeds.dtype
    """
    B, S, H = image_embeds.shape
    H4 = w1.shape[1]
    M = B * S
    out_dtype = image_embeds.dtype

    # bf16 MXU path (default): cast activations/weights; biases stay f32 and
    # are added to the f32 MXU accumulators.  In a real deployment the weights
    # should be stored pre-cast so these casts are free.
    cdt = jnp.dtype(compute_dtype)
    sub = 16 if cdt.itemsize == 2 else 8
    x2 = image_embeds.reshape(M, H).astype(cdt)
    w1c = w1.astype(cdt)
    w2c = w2.astype(cdt)
    b1_2d = b1.reshape(1, H4).astype(jnp.float32)
    b2_2d = b2.reshape(1, H).astype(jnp.float32)

    tm_eff = _pick_tm(M, tm, sub)
    budget = _vmem_budget_bytes()

    ws_res = _resident_ws_bytes(tm_eff, H, H4, cdt, out_dtype)
    if not force_chunked and ws_res <= budget:
        out2 = _mlp_resident(x2, w1c, b1_2d, w2c, b2_2d,
                             tm=tm_eff, out_dtype=out_dtype,
                             vmem_limit=_vmem_limit(ws_res, budget))
    else:
        tn_eff = _pick_tn(H4, tn)
        ws_chk = _chunked_ws_bytes(tm_eff, tn_eff, H, cdt, out_dtype)
        out2 = _mlp_chunked(x2, w1c, b1_2d, w2c, b2_2d,
                            tm=tm_eff, tn=tn_eff, out_dtype=out_dtype,
                            vmem_limit=_vmem_limit(ws_chk, budget))
    return out2.reshape(B, S, H)


def _reference_mlp(x, w1, b1, w2, b2, compute_dtype=jnp.float32):
    """Pure-JAX reference of the same MLP (exact erf GELU), emulating the
    kernel's compute-dtype rounding when compute_dtype != float32."""
    cd = jnp.dtype(compute_dtype)
    f32 = jnp.float32
    xf = x.astype(cd).astype(f32)
    w1f = w1.astype(cd).astype(f32)
    w2f = w2.astype(cd).astype(f32)
    h = xf @ w1f + b1.astype(f32)
    h = 0.5 * h * (1.0 + jax.lax.erf(h / f32(math.sqrt(2.0))))
    h = h.astype(cd).astype(f32)
    o = h @ w2f + b2.astype(f32)
    return o.astype(x.dtype)


# --------------------------------------------------------------------------- test

if __name__ == "__main__":
    key = jax.random.PRNGKey(0)

    def make_inputs(k, B, S, H):
        H4 = 4 * H
        k_x, k_w1, k_b1, k_w2, k_b2 = jax.random.split(k, 5)
        # Stand-in for CLIP hidden_states[-2] (the backbone is an external
        # pretrained model).
        x = jax.random.normal(k_x, (B, S, H), dtype=jnp.float32)
        # nn.Linear-style init: U(-1/sqrt(fan_in), 1/sqrt(fan_in)), stored (in, out).
        lim1 = 1.0 / math.sqrt(H)
        lim2 = 1.0 / math.sqrt(H4)
        w1 = jax.random.uniform(k_w1, (H, H4), jnp.float32, -lim1, lim1)
        b1 = jax.random.uniform(k_b1, (H4,), jnp.float32, -lim1, lim1)
        w2 = jax.random.uniform(k_w2, (H4, H), jnp.float32, -lim2, lim2)
        b2 = jax.random.uniform(k_b2, (H,), jnp.float32, -lim2, lim2)
        return x, w1, b1, w2, b2

    # --- Test 1: weight-resident path, bf16 MXU compute (default). ------------
    B, S, H = 2, 8, 32
    x, w1, b1, w2, b2 = make_inputs(key, B, S, H)
    out = jax.block_until_ready(reference_encoder_mlp(x, w1, b1, w2, b2))
    ref = _reference_mlp(x.reshape(B * S, H), w1, b1, w2, b2,
                         jnp.bfloat16).reshape(B, S, H)
    assert out.shape == (B, S, H)
    assert jnp.allclose(out, ref, atol=1e-2, rtol=1e-2), "bf16 resident path mismatch"

    # --- Test 2: weight-resident path, f32 compute (tight exact-math check). --
    out32 = jax.block_until_ready(
        reference_encoder_mlp(x, w1, b1, w2, b2, compute_dtype=jnp.float32))
    ref32 = _reference_mlp(x.reshape(B * S, H), w1, b1, w2, b2,
                           jnp.float32).reshape(B, S, H)
    assert jnp.allclose(out32, ref32, atol=1e-4, rtol=1e-4), "f32 resident path mismatch"

    # --- Test 3: weight-streaming (chunked) fallback: multi-step k axis plus a
    #     partial (masked) last row tile (M = 18 rows over tm = 16). -----------
    B3, S3, H3 = 2, 9, 256
    x3, w13, b13, w23, b23 = make_inputs(jax.random.fold_in(key, 1), B3, S3, H3)
    out3 = jax.block_until_ready(
        reference_encoder_mlp(x3, w13, b13, w23, b23, tn=256, force_chunked=True))
    ref3 = _reference_mlp(x3.reshape(B3 * S3, H3), w13, b13, w23, b23,
                          jnp.bfloat16).reshape(B3, S3, H3)
    assert out3.shape == (B3, S3, H3)
    assert jnp.allclose(out3, ref3, atol=1e-2, rtol=1e-2), "chunked path mismatch"

    print("KERNEL_OK")
</pallas_src>

<mosaic_0001>
module attributes {stable_mosaic.version = 11 : i64} {
  func.func @_mlp_resident_kernel(%arg0: i32, %arg1: memref<16x32xbf16, #tpu.memory_space<vmem>>, %arg2: memref<32x128xbf16, #tpu.memory_space<vmem>>, %arg3: memref<1x128xf32, #tpu.memory_space<vmem>>, %arg4: memref<128x32xbf16, #tpu.memory_space<vmem>>, %arg5: memref<1x32xf32, #tpu.memory_space<vmem>>, %arg6: memref<16x32xf32, #tpu.memory_space<vmem>>) attributes {dimension_semantics = [#tpu.dimension_semantics<parallel>], iteration_bounds = array<i64: 1>, scalar_prefetch = 0 : i64, scratch_operands = 0 : i64, tpu.core_type = #tpu.core_type<tc>, window_params = [{transform_indices = @transform_0, window_bounds = array<i64: 16, 32>}, {pipeline_mode = #tpu.pipeline_mode<synchronous>, transform_indices = @transform_1, window_bounds = array<i64: 32, 128>}, {pipeline_mode = #tpu.pipeline_mode<synchronous>, transform_indices = @transform_2, window_bounds = array<i64: 1, 128>}, {pipeline_mode = #tpu.pipeline_mode<synchronous>, transform_indices = @transform_3, window_bounds = array<i64: 128, 32>}, {pipeline_mode = #tpu.pipeline_mode<synchronous>, transform_indices = @transform_4, window_bounds = array<i64: 1, 32>}, {transform_indices = @transform_5, window_bounds = array<i64: 16, 32>}]} {
    %c0 = arith.constant 0 : index
    %c0_0 = arith.constant 0 : index
    %0 = vector.load %arg1[%c0, %c0_0] : memref<16x32xbf16, #tpu.memory_space<vmem>>, vector<16x32xbf16>
    %c0_1 = arith.constant 0 : index
    %c0_2 = arith.constant 0 : index
    %1 = vector.load %arg2[%c0_1, %c0_2] : memref<32x128xbf16, #tpu.memory_space<vmem>>, vector<32x128xbf16>
    %cst = arith.constant dense<0.000000e+00> : vector<16x128xf32>
    %2 = tpu.matmul %0, %1, %cst {dimension_numbers = #tpu.dot_dimension_numbers<[1], [0], [0], [1], [0, 0, 1, 1], [], []>} : vector<16x32xbf16>, vector<32x128xbf16>, vector<16x128xf32> -> vector<16x128xf32>
    %c0_3 = arith.constant 0 : index
    %c0_4 = arith.constant 0 : index
    %3 = vector.load %arg3[%c0_3, %c0_4] : memref<1x128xf32, #tpu.memory_space<vmem>>, vector<1x128xf32>
    %4 = vector.broadcast %3 : vector<1x128xf32> to vector<16x128xf32>
    %5 = arith.addf %2, %4 : vector<16x128xf32>
    %cst_5 = arith.constant 5.000000e-01 : f32
    %6 = vector.broadcast %cst_5 : f32 to vector<16x128xf32>
    %7 = arith.mulf %6, %5 : vector<16x128xf32>
    %cst_6 = arith.constant 0.707106769 : f32
    %8 = vector.broadcast %cst_6 : f32 to vector<16x128xf32>
    %9 = arith.mulf %5, %8 : vector<16x128xf32>
    %10 = math.erf %9 : vector<16x128xf32>
    %cst_7 = arith.constant 1.000000e+00 : f32
    %11 = vector.broadcast %cst_7 : f32 to vector<16x128xf32>
    %12 = arith.addf %11, %10 : vector<16x128xf32>
    %13 = arith.mulf %7, %12 : vector<16x128xf32>
    %14 = arith.truncf %13 : vector<16x128xf32> to vector<16x128xbf16>
    %c0_8 = arith.constant 0 : index
    %c0_9 = arith.constant 0 : index
    %15 = vector.load %arg4[%c0_8, %c0_9] : memref<128x32xbf16, #tpu.memory_space<vmem>>, vector<128x32xbf16>
    %cst_10 = arith.constant dense<0.000000e+00> : vector<16x32xf32>
    %16 = tpu.matmul %14, %15, %cst_10 {dimension_numbers = #tpu.dot_dimension_numbers<[1], [0], [0], [1], [0, 0, 1, 1], [], []>} : vector<16x128xbf16>, vector<128x32xbf16>, vector<16x32xf32> -> vector<16x32xf32>
    %c0_11 = arith.constant 0 : index
    %c0_12 = arith.constant 0 : index
    %17 = vector.load %arg5[%c0_11, %c0_12] : memref<1x32xf32, #tpu.memory_space<vmem>>, vector<1x32xf32>
    %18 = vector.broadcast %17 : vector<1x32xf32> to vector<16x32xf32>
    %19 = arith.addf %16, %18 : vector<16x32xf32>
    %c0_13 = arith.constant 0 : index
    %c0_14 = arith.constant 0 : index
    %20 = vector.load %arg6[%c0_13, %c0_14] : memref<16x32xf32, #tpu.memory_space<vmem>>, vector<16x32xf32>
    tpu.vector_store %arg6[%c0_13, %c0_14], %19 {strides = array<i32>} : memref<16x32xf32, #tpu.memory_space<vmem>>, vector<16x32xf32>,
    return
  }
  func.func @transform_0(%arg0: i32) -> (i32, i32) {
    %c0_i32 = arith.constant 0 : i32
    %c0_i32_0 = arith.constant 0 : i32
    return %arg0, %c0_i32 : i32, i32
  }
  func.func @transform_1(%arg0: i32) -> (i32, i32) {
    %c0_i32 = arith.constant 0 : i32
    %c0_i32_0 = arith.constant 0 : i32
    %c0_i32_1 = arith.constant 0 : i32
    return %c0_i32, %c0_i32_0 : i32, i32
  }
  func.func @transform_2(%arg0: i32) -> (i32, i32) {
    %c0_i32 = arith.constant 0 : i32
    %c0_i32_0 = arith.constant 0 : i32
    %c0_i32_1 = arith.constant 0 : i32
    return %c0_i32, %c0_i32_0 : i32, i32
  }
  func.func @transform_3(%arg0: i32) -> (i32, i32) {
    %c0_i32 = arith.constant 0 : i32
    %c0_i32_0 = arith.constant 0 : i32
    %c0_i32_1 = arith.constant 0 : i32
    return %c0_i32, %c0_i32_0 : i32, i32
  }
  func.func @transform_4(%arg0: i32) -> (i32, i32) {
    %c0_i32 = arith.constant 0 : i32
    %c0_i32_0 = arith.constant 0 : i32
    %c0_i32_1 = arith.constant 0 : i32
    return %c0_i32, %c0_i32_0 : i32, i32
  }
  func.func @transform_5(%arg0: i32) -> (i32, i32) {
    %c0_i32 = arith.constant 0 : i32
    %c0_i32_0 = arith.constant 0 : i32
    return %arg0, %c0_i32 : i32, i32
  }
}

</mosaic_0001>

<bundles_post_ra>
// kernel: _mlp_resident.1
= control target key start
LH: loop header
LB: loop body
LE: loop exit
PB: predicated region body
PF: predicated region fallthrough
CT: control target
= control target key end

     0   :  { %v336_v1 = vmov 0.0   ;;  %vm337_vm0 = vmmov 0   ;;  %vm52_vm1 = vcmask 261120   ;;  %s425_s0 = inlined_call_operand.vmem [shape: bf16[16,32], index: 0, kind: input, shape index: {}]   ;;  %s426_s1 = inlined_call_operand.vmem [shape: bf16[32,128], index: 1, kind: input, shape index: {}]   ;;  %s427_s2 = inlined_call_operand.vmem [shape: f32[1,128], index: 2, kind: input, shape index: {}]   ;;  %s428_s3 = inlined_call_operand.vmem [shape: bf16[128,32], index: 3, kind: input, shape index: {}]   ;;  %s429_s4 = inlined_call_operand.vmem [shape: f32[1,32], index: 4, kind: input, shape index: {}]   ;;  %s430_s5 = inlined_call_operand.hbm [shape: f32[16,32], index: 5, kind: output, shape index: {}]  }
   0x1   :  { %v297_v0 = vld [vmem:[%s426_s1] sm:$0xff]   ;;  %264 = vmatprep.subr.bf16.mxu0 %v336_v1  ;;  %272 = vmatprep.subr.bf16.mxu1 %v336_v1  ;;  %v298_v2 = vld [vmem:[%s426_s1 + $0x8] sm:$0xff]  }
   0x2   :  { %265 = vmatpush3.bf16.msra.mxu0 %v297_v0  ;;  %268 = vmatprep.mubr.msk.bf16.mxu0 %vm337_vm0, %v336_v1  ;;  %v300_v3 = vld [vmem:[%s428_s3] sm:$0xff]   ;;  %v301_v5 = vld [vmem:[%s428_s3 + $0x8] sm:$0xff]  }
   0x3   :  { %266 = vmatprep.subr.bf16.mxu0 %v336_v1  ;;  %288 = vmatprep.mubr.msk.bf16.mxu1 %vm337_vm0, %v336_v1  ;;  %v299_v4 = vld [vmem:[%s425_s0] sm:$0xff]  }
   0x4   :  { %273 = vmatpush3.bf16.msra.mxu1 %v300_v3 }
   0x5   :  { %274 = vmatprep.subr.bf16.mxu1 %v336_v1 }
   0x6   :  { %267 = vmatpush3.bf16.msra.mxu0 %v298_v2 }
   0x8   :  { %275 = vmatpush3.bf16.msra.mxu1 %v301_v5 }
   0x9   :  { %269 = vmatmul.mubr.msk.bf16.vlgmr.msra.gmra.mrb[0].mxu0 %vm52_vm1, %v299_v4 }
   0xa   :  { %10 = vsyncpa [#allocation3], 0  ;;  %276 = vmatprep.subr.bf16.mxu1 %v336_v1  ;;  %v302_v6 = vld [vmem:[%s428_s3 + $0x10] sm:$0xff]   ;;  %v303_v7 = vld [vmem:[%s428_s3 + $0x18] sm:$0xff]   ;;  %s338_s15 = smov [#allocation2]  }
   0xb   :  { %v304_v8 = vld [vmem:[%s428_s3 + $0x20] sm:$0xff]   ;;  %v305_v9 = vld [vmem:[%s428_s3 + $0x28] sm:$0xff]   ;;  %v306_v10 = vld [vmem:[%s428_s3 + $0x30] sm:$0xff]   ;;  %s227_s16 = sshll.u32 %s338_s15, 4  ;;  %s228_s16 = int_to_ptr.vmem [resolvable:$true] %s227_s16 }
   0xc   :  { %277 = vmatpush3.bf16.msra.mxu1 %v302_v6  ;;  %v307_v11 = vld [vmem:[%s428_s3 + $0x38] sm:$0xff]   ;;  %v238_v12 = vld [vmem:[%s427_s2] ss:$0 sm:$0xff]  ;;  %s312_s17 = scalar_lea.vmem %s228_s16, 256  ;;  %p317_p1 = scmp.lt.s32.totalorder %s228_s16, %s228_s16 }
   0xd   :  { %278 = vmatprep.subr.bf16.mxu1 %v336_v1  ;;  %v243_v30 = vld [vmem:[%s429_s4] ss:$0 sm:$0xff]  ;;  %p313_p0 = scmp.ne.s32.totalorder %s228_s16, %s312_s17  ;;  %p318_p2 = scmp.lt.s32.totalorder %s312_s17, %s312_s17 }
   0xf   :  { %p319_p3 = por %p318_p2, %p317_p1 }
  0x10   :  { %279 = vmatpush3.bf16.msra.mxu1 %v303_v7 }
  0x11   :  { %280 = vmatprep.subr.bf16.mxu1 %v336_v1  ;;  %p320_p4 = pnand %p319_p3, %p313_p0 }
  0x14   :  { %281 = vmatpush3.bf16.msra.mxu1 %v304_v8 }
  0x15   :  { %282 = vmatprep.subr.bf16.mxu1 %v336_v1 }
  0x18   :  { %283 = vmatpush3.bf16.msra.mxu1 %v305_v9 }
  0x19   :  { %284 = vmatprep.subr.bf16.mxu1 %v336_v1 }
  0x1c   :  { %285 = vmatpush3.bf16.msra.mxu1 %v306_v10 }
  0x1d   :  { %286 = vmatprep.subr.bf16.mxu1 %v336_v1 }
  0x20   :  { %287 = vmatpush3.bf16.msra.mxu1 %v307_v11 }
  0xdc   :  { %v90_v13 = vpop.f32.mrb[0].mxu0 }
  0xdd   :  { %v91_v14 = vadd.f32 %v238_v12, %v90_v13  ;;  %v270_v15 = vpop.f32.mrb[1].mxu0 }
  0xde   :  { %v93_v16 = vpop.f32.mrb[2].mxu0 }
  0xdf   :  { %v99_v17 = vmul.f32 0.70710677, %v91_v14  ;;  %v94_v18 = vadd.f32 %v238_v12, %v93_v16  ;;  %v271_v19 = vpop.f32.mrb[3].mxu0  ;;  %v97_v24 = vmul.f32 0.5, %v91_v14 }
  0xe1   :  { %308 = verf.f32 %v99_v17  ;;  %v100_v20 = vmul.f32 0.70710677, %v94_v18  ;;  %v98_v25 = vmul.f32 0.5, %v94_v18 }
  0xe3   :  { %310 = verf.f32 %v100_v20 }
  0xeb   :  { %v309_v21 = vpop.eup %308 }
  0xec   :  { %v103_v22 = vadd.f32 1.0, %v309_v21 }
  0xed   :  { %v311_v23 = vpop.eup %310 }
  0xee   :  { %v104_v26 = vadd.f32 1.0, %v311_v23  ;;  %v105_v27 = vmul.f32 %v103_v22, %v97_v24 }
  0xf0   :  { %v106_v28 = vmul.f32 %v104_v26, %v98_v25 }
  0xf2   :  { %v107_v29 = vpack.c.bf16 %v106_v28, %v105_v27 }
  0xf4   :  { %289 = vmatmul.mubr.bf16.vlgmr.msra.gmra.mrb[0].mxu1 %v107_v29 }
 0x1c7   :  { %v213_v31 = vpop.f32.mrb[0].mxu1 }
 0x1c8   :  { %v214_v32 = vadd.f32 %v243_v30, %v213_v31  ;;  %v290_v33 = vpop.f32.mrb[1].mxu1 }
 0x1c9   :  { %v216_v34 = vpop.f32.mrb[2].mxu1 }
 0x1ca   :  { %220 = vst.msk [vmem:[#allocation2] sm:$0xff] %vm52_vm1, %v214_v32  ;;  %v217_v35 = vadd.f32 %v243_v30, %v216_v34  ;;  %v291_v36 = vpop.f32.mrb[3].mxu1 }
 0x1cc   :  { %221 = vst.msk [vmem:[#allocation2 + $0x8] sm:$0xff] %vm52_vm1, %v217_v35 }
 0x1cd   :  { %323 = shalt.err (!%p320_p4)
}
 0x1ce   :  { %s324_s19 = scalar_lea.hbm %s430_s5, 256 }
 0x1cf   :  { %p325_p5 = scmp.ne.s32.totalorder %s430_s5, %s324_s19  ;;  %p328_p6 = scmp.lt.u32.totalorder %s324_s19, %s430_s5 }
 0x1d1   :  { %p330_p7 = pnand %p328_p6, %p325_p5 }
 0x1d3   :  { %333 = shalt.err (!%p330_p7)
}
 0x1d4   :  { %s339_s24 = smov 128   ;;  %s340_s25 = smov 8  }
 0x1d5   :  { %233 = dma.vmem_to_hbm [thread:$0]  %s228_s16, 256, %s430_s5, [#allocation3], %s339_s24, %s339_s24, %s340_s25  }
 0x1d6   :  { %334 = dma.done.wait [#allocation3], 256  }
 0x1d7   :  { %335 = vsyncadd [#allocation3], 4294967040 }
 0x1d8   :  { %237 = vsyncpa [#allocation3], 1 }

</bundles_post_ra>
